<compile_context>
chip_gen: v5e
topology: v5e:2x2
jax: 0.10.0
libtpu: 0.0.40
codegen_flags: <defaults>
</compile_context>

<pallas_src>
import functools

import numpy as np

import jax
import jax.numpy as jnp
from jax import lax
from jax.experimental import pallas as pl
from jax.experimental.pallas import tpu as pltpu


# -----------------------------------------------------------------------------
# pltpu.roll direction probe (defensive): +1 if it matches np.roll semantics
# (out[p] = in[(p - shift) % N]), -1 if it is the inverse convention.  Probed
# once on the real backend so the depthwise tap shifts are robust.
# -----------------------------------------------------------------------------
@functools.cache
def _pltpu_roll_sign():
    def _probe_kernel(x_ref, o_ref):
        o_ref[...] = pltpu.roll(x_ref[...], shift=1, axis=1)

    x = lax.broadcasted_iota(jnp.float32, (8, 128), 1)
    y = pl.pallas_call(
        _probe_kernel,
        out_shape=jax.ShapeDtypeStruct((8, 128), jnp.float32),
    )(x)
    v = int(round(float(y[0, 0])))
    if v == 127:      # np.roll convention
        return 1
    if v == 1:        # inverse convention
        return -1
    raise RuntimeError(f"unexpected pltpu.roll probe value: {v}")


# -----------------------------------------------------------------------------
# Fused Pallas kernel: 1x1 expand + 3x3 depthwise + 1x1 project (+ residual)
# Activations are (C, HW): channels on sublanes, flattened spatial on lanes.
# -----------------------------------------------------------------------------
def _fused_block_kernel(x_ref, *rest, H, W, nb, roll_sign,
                        a_in, a_dw, a_pr, has_expand, residual):
    if has_expand:
        (w0_ref, s0_ref, b0_ref,
         wd_ref, sd_ref, bd_ref,
         w2_ref, s2_ref, b2_ref, o_ref) = rest
    else:
        (wd_ref, sd_ref, bd_ref,
         w2_ref, s2_ref, b2_ref, o_ref) = rest

    HW = H * W

    # Lane-position iota and edge masks, built once per grid step and shared by
    # every image in the block.  (1, HW) so they sublane-broadcast for free.
    pos = lax.broadcasted_iota(jnp.int32, (1, HW), 1)
    if W & (W - 1) == 0:
        col = jnp.bitwise_and(pos, W - 1)
    else:
        col = pos % W
    is_col_last = col == (W - 1)      # input cols the j==0 taps must never see
    is_col_first = col == 0           # input cols the j==2 taps must never see
    row_top_ok = pos >= W             # output positions with a valid row above
    row_bot_ok = pos < (HW - W)       # output positions with a valid row below

    # Hoist all parameter loads out of the per-image loop.
    if has_expand:
        w0 = w0_ref[...]              # (Cexp, Cin) bf16
        s0 = s0_ref[...]              # (Cexp, 1)  f32
        b0 = b0_ref[...]
    wtaps = [wd_ref[k] for k in range(9)]    # 9 x (Cexp, 1) f32
    sd = sd_ref[...]
    bd = bd_ref[...]
    w2 = w2_ref[...]                  # (Cout, Cexp) bf16
    s2 = s2_ref[...]
    b2 = b2_ref[...]

    for b in range(nb):               # small static unroll over the image block
        x = x_ref[b]                  # (Cin, HW) f32

        # ---- 1x1 expand conv + folded BN : bf16 MXU matmul, f32 accumulate --
        if has_expand:
            xq = jnp.clip(x, 0.0, a_in).astype(jnp.bfloat16)
            e = jnp.dot(w0, xq, preferred_element_type=jnp.float32)  # (Cexp, HW)
            e = e * s0 + b0
        else:
            e = x

        # ---- 3x3 depthwise conv (stride 1, pad 1) + folded BN ---------------
        # clip hoisted out of the 9-tap loop; taps are lane rolls (XLU) of the
        # clipped activation.  w-edge wrap is killed by 2 pre-masked source
        # copies, h-edge wrap by one mask per vertical tap group.
        ec = jnp.clip(e, 0.0, a_dw)                       # (Cexp, HW) f32
        ec_l = jnp.where(is_col_last, 0.0, ec)            # source for j == 0
        ec_r = jnp.where(is_col_first, 0.0, ec)           # source for j == 2
        srcs = (ec_l, ec, ec_r)

        acc = None
        for i in range(3):                                # fully unrolled: 9 taps
            part = None
            for j in range(3):
                off = (i - 1) * W + (j - 1)               # flattened-HW shift
                src = srcs[j]
                if off == 0:
                    tap = src
                else:
                    tap = pltpu.roll(src, shift=(-roll_sign * off) % HW, axis=1)
                term = tap * wtaps[i * 3 + j]
                part = term if part is None else part + term
            if i == 0:
                part = jnp.where(row_top_ok, part, 0.0)
            elif i == 2:
                part = jnp.where(row_bot_ok, part, 0.0)
            acc = part if acc is None else acc + part
        d = acc * sd + bd                                 # (Cexp, HW) f32

        # ---- 1x1 project conv + folded BN (+ fused residual add) ------------
        dq = jnp.clip(d, 0.0, a_pr).astype(jnp.bfloat16)
        y = jnp.dot(w2, dq, preferred_element_type=jnp.float32)      # (Cout, HW)
        y = y * s2 + b2
        if residual:
            y = y + x
        o_ref[b] = y                                      # lane-dense store


# -----------------------------------------------------------------------------
# Wrapper
# -----------------------------------------------------------------------------
def _pick_block_batch(n):
    """Largest block batch <= 8 that still leaves >= 2 parallel grid steps."""
    for nb in (8, 4, 2):
        if n % nb == 0 and n // nb >= 2:
            return nb
    return 1


def inverted_residual_forward(x_nchw, params, stride, expand_ratio,
                              block_batch=None):
    """Forward pass of InvertedResidual.  x_nchw: (N, Cin, H, W) float32."""
    if stride != 1:
        raise NotImplementedError("stride=2 depthwise not implemented")  # TODO(synk)

    N, Cin, H, W = x_nchw.shape
    HW = H * W
    has_expand = expand_ratio != 1
    Cexp = params["wd"].shape[-1]
    Cout = params["w2"].shape[1]
    residual = (stride == 1) and (Cin == Cout)
    for name in (["a0"] if has_expand else []) + ["ad", "a2"]:
        assert params[name] >= 0.0, "ReLU-clip alpha must be non-negative"

    nb = block_batch if block_batch is not None else _pick_block_batch(N)
    assert N % nb == 0

    # NCHW is already channels-major: only a reshape is needed (both wrapper
    # transposes of the old (HW, C) layout are gone).
    x = x_nchw.reshape(N, Cin, HW)

    # Weights pre-arranged for the (C, HW) layout (tiny, one-time).
    wd9 = params["wd"].reshape(9, Cexp)[:, :, None]             # (9, Cexp, 1)
    sd = params["sd"].reshape(Cexp, 1)
    bd = params["bd"].reshape(Cexp, 1)
    w2t = jnp.transpose(params["w2"]).astype(jnp.bfloat16)      # (Cout, Cexp)
    s2 = params["s2"].reshape(Cout, 1)
    b2 = params["b2"].reshape(Cout, 1)

    in_specs = [pl.BlockSpec((nb, Cin, HW), lambda n: (n, 0, 0))]
    args = [x]
    if has_expand:
        w0t = jnp.transpose(params["w0"]).astype(jnp.bfloat16)  # (Cexp, Cin)
        in_specs += [pl.BlockSpec((Cexp, Cin), lambda n: (0, 0)),
                     pl.BlockSpec((Cexp, 1), lambda n: (0, 0)),
                     pl.BlockSpec((Cexp, 1), lambda n: (0, 0))]
        args += [w0t,
                 params["s0"].reshape(Cexp, 1),
                 params["b0"].reshape(Cexp, 1)]
    in_specs += [pl.BlockSpec((9, Cexp, 1), lambda n: (0, 0, 0)),
                 pl.BlockSpec((Cexp, 1), lambda n: (0, 0)),
                 pl.BlockSpec((Cexp, 1), lambda n: (0, 0)),
                 pl.BlockSpec((Cout, Cexp), lambda n: (0, 0)),
                 pl.BlockSpec((Cout, 1), lambda n: (0, 0)),
                 pl.BlockSpec((Cout, 1), lambda n: (0, 0))]
    args += [wd9, sd, bd, w2t, s2, b2]

    kern = functools.partial(
        _fused_block_kernel, H=H, W=W, nb=nb, roll_sign=_pltpu_roll_sign(),
        a_in=float(params.get("a0", 0.0)), a_dw=float(params["ad"]),
        a_pr=float(params["a2"]), has_expand=has_expand, residual=residual)

    flops = 2 * N * HW * Cexp * ((Cin if has_expand else 0) + 9 + Cout)
    bytes_accessed = N * HW * (Cin + Cout) * 4
    for a in args[1:]:
        bytes_accessed += int(np.prod(a.shape)) * a.dtype.itemsize

    out = pl.pallas_call(
        kern,
        out_shape=jax.ShapeDtypeStruct((N, Cout, HW), jnp.float32),
        grid=(N // nb,),
        in_specs=in_specs,
        out_specs=pl.BlockSpec((nb, Cout, HW), lambda n: (n, 0, 0)),
        compiler_params=pltpu.CompilerParams(dimension_semantics=("parallel",)),
        cost_estimate=pl.CostEstimate(flops=int(flops), transcendentals=0,
                                      bytes_accessed=int(bytes_accessed)),
    )(*args)

    return out.reshape(N, Cout, H, W)                    # already NCHW


# -----------------------------------------------------------------------------
# Pure-JAX reference (same bf16-matmul / f32-accumulate numerics)
# -----------------------------------------------------------------------------
def _reference(x_nchw, params, stride, expand_ratio):
    x = jnp.transpose(x_nchw, (0, 2, 3, 1))              # NHWC
    N, H, W, Cin = x.shape
    Cout = params["w2"].shape[1]

    res = x
    if expand_ratio != 1:
        xq = jnp.clip(res, 0.0, params["a0"]).astype(jnp.bfloat16)
        res = jnp.einsum("nhwc,cd->nhwd", xq,
                         params["w0"].astype(jnp.bfloat16),
                         preferred_element_type=jnp.float32)
        res = res * params["s0"] + params["b0"]

    xc = jnp.clip(res, 0.0, params["ad"])
    xp = jnp.pad(xc, ((0, 0), (1, 1), (1, 1), (0, 0)))
    acc = jnp.zeros_like(xc)
    for i in range(3):
        for j in range(3):
            acc = acc + xp[:, i:i + H, j:j + W, :] * params["wd"][i, j, :]
    res = acc * params["sd"] + params["bd"]

    dq = jnp.clip(res, 0.0, params["a2"]).astype(jnp.bfloat16)
    res = jnp.einsum("nhwc,cd->nhwd", dq,
                     params["w2"].astype(jnp.bfloat16),
                     preferred_element_type=jnp.float32)
    res = res * params["s2"] + params["b2"]

    if stride == 1 and Cin == Cout:
        res = res + x
    return jnp.transpose(res, (0, 3, 1, 2))


# -----------------------------------------------------------------------------
# Parameter construction (deterministic, synthetic, independent PRNG keys)
# -----------------------------------------------------------------------------
def make_params(key, inp, outp, expand_ratio, eps=1e-5):
    expand_inp = inp * expand_ratio
    ks = jax.random.split(key, 6)

    def bn_fold(k, c):
        kg, kb, km, kv = jax.random.split(k, 4)
        gamma = 1.0 + 0.1 * jax.random.normal(kg, (c,), jnp.float32)
        beta = 0.1 * jax.random.normal(kb, (c,), jnp.float32)
        mean = 0.1 * jax.random.normal(km, (c,), jnp.float32)
        var = jnp.abs(jax.random.normal(kv, (c,), jnp.float32)) + 0.5
        scale = gamma / jnp.sqrt(var + eps)
        bias = beta - mean * scale
        return scale, bias

    p = {}
    if expand_ratio != 1:
        p["w0"] = 0.2 * jax.random.normal(ks[0], (inp, expand_inp), jnp.float32)
        p["s0"], p["b0"] = bn_fold(ks[1], expand_inp)
        p["a0"] = 6.0
    p["wd"] = 0.2 * jax.random.normal(ks[2], (3, 3, expand_inp), jnp.float32)
    p["sd"], p["bd"] = bn_fold(ks[3], expand_inp)
    p["ad"] = 6.0
    p["w2"] = 0.2 * jax.random.normal(ks[4], (expand_inp, outp), jnp.float32)
    p["s2"], p["b2"] = bn_fold(ks[5], outp)
    p["a2"] = 6.0
    return p


# -----------------------------------------------------------------------------
if __name__ == "__main__":
    # InvertedResidual(inp=8, outp=8, stride=1, expand_ratio=6) -> residual path.
    # N=4 so the block-batched path (2 images / grid step, 2 parallel steps)
    # is exercised.
    N, Cin, H, W = 4, 8, 16, 16
    Cout, stride, expand_ratio = 8, 1, 6

    key = jax.random.PRNGKey(0)
    kx, kp = jax.random.split(key)
    x = jax.random.normal(kx, (N, Cin, H, W), jnp.float32)
    params = make_params(kp, Cin, Cout, expand_ratio)

    out = jax.block_until_ready(
        inverted_residual_forward(x, params, stride, expand_ratio))
    ref = jax.block_until_ready(_reference(x, params, stride, expand_ratio))

    assert out.shape == (N, Cout, H, W)
    max_err = float(jnp.max(jnp.abs(out - ref)))
    assert jnp.allclose(out, ref, atol=5e-4, rtol=5e-4), max_err

    print("KERNEL_OK")
</pallas_src>

<mosaic_0001>
module attributes {stable_mosaic.version = 11 : i64} {
  func.func @_probe_kernel(%arg0: memref<8x128xf32, #tpu.memory_space<vmem>>, %arg1: memref<8x128xf32, #tpu.memory_space<vmem>>) attributes {dimension_semantics = [], scalar_prefetch = 0 : i64, scratch_operands = 0 : i64, tpu.core_type = #tpu.core_type<tc>} {
    %c0 = arith.constant 0 : index
    %c0_0 = arith.constant 0 : index
    %0 = vector.load %arg0[%c0, %c0_0] : memref<8x128xf32, #tpu.memory_space<vmem>>, vector<8x128xf32>
    %c1_i32 = arith.constant 1 : i32
    %1 = tpu.dynamic_rotate %0 by %c1_i32 dim 1 : vector<8x128xf32>, i32 -> vector<8x128xf32>
    %c0_1 = arith.constant 0 : index
    %c0_2 = arith.constant 0 : index
    %2 = vector.load %arg1[%c0_1, %c0_2] : memref<8x128xf32, #tpu.memory_space<vmem>>, vector<8x128xf32>
    tpu.vector_store %arg1[%c0_1, %c0_2], %1 {strides = array<i32>} : memref<8x128xf32, #tpu.memory_space<vmem>>, vector<8x128xf32>,
    return
  }
}

</mosaic_0001>

<bundles_post_ra>
// kernel: tpu_custom_call.1
= control target key start
LH: loop header
LB: loop body
LE: loop exit
PB: predicated region body
PF: predicated region fallthrough
CT: control target
= control target key end

     0   :  { %6 = vsyncpa [#allocation3], 0  ;;  %s118_s0 = inlined_call_operand.hbm [shape: f32[8,128], index: 0, kind: input, shape index: {}]   ;;  %s119_s1 = inlined_call_operand.hbm [shape: f32[8,128], index: 1, kind: output, shape index: {}]  }
   0x1   :  { %7 = vsyncpa [#allocation4], 0  ;;  %s13_s8 = sshll.u32 %s118_s0, 4  ;;  %s99_s9 = smov [#allocation2]   ;;  %s14_s8 = int_to_ptr.hbm [resolvable:$true] %s13_s8 }
   0x2   :  { %s15_s10 = sshll.u32 %s99_s9, 4  ;;  %s16_s10 = int_to_ptr.vmem [resolvable:$true] %s15_s10 }
   0x3   :  { %18 = dma.hbm_to_vmem [thread:$0]  %s14_s8, 128, %s16_s10, [#allocation3]  }
   0x4   :  { %95 = dma.done.wait [#allocation3], 128  }
   0x5   :  { %96 = vsyncadd [#allocation3], 4294967168  ;;  %v23_v0 = vld [vmem:[#allocation2] sm:$0xff]  ;;  %s100_s11 = smov 1   ;;  %s101_s12 = smov [#allocation5]  }
   0x6   :  { %24 = vrot.lane.b32.xlu0 %v23_v0, %s100_s11  ;;  %s32_s13 = sshll.u32 %s101_s12, 4  ;;  %s34_s16 = sshll.u32 %s119_s1, 4  ;;  %s33_s13 = int_to_ptr.vmem [resolvable:$true] %s32_s13  ;;  %s35_s16 = int_to_ptr.hbm [resolvable:$true] %s34_s16 }
  0x78   :  { %v25_v1 = vpop.permute.xlu0 %24 }
  0x79   :  { %26 = vst [vmem:[#allocation5] sm:$0xff] %v25_v1 }
  0x7a   :  { %37 = dma.vmem_to_hbm [thread:$0]  %s33_s13, 128, %s35_s16, [#allocation4]  }
  0x7b   :  { %97 = dma.done.wait [#allocation4], 128  }
  0x7c   :  { %98 = vsyncadd [#allocation4], 4294967168 }
  0x7d   :  { %42 = vsyncpa [#allocation3], 1 }
  0x7e   :  { %43 = vsyncpa [#allocation4], 1 }

</bundles_post_ra>
